<compile_context>
chip_gen: v7x
topology: tpu7x:2x2x1
jax: 0.10.0
libtpu: 0.0.40
codegen_flags: <defaults>
</compile_context>

<pallas_src>
import numpy as np
import jax
import jax.numpy as jnp
from jax.experimental import pallas as pl
from jax.experimental.pallas import tpu as pltpu


def _hadamard_matrix(n: int) -> np.ndarray:
    """Sylvester construction of the n x n Hadamard matrix (n must be a power of 2)."""
    assert n >= 1 and (n & (n - 1)) == 0, "dim must be a power of 2"
    h = np.array([[1.0]], dtype=np.float32)
    while h.shape[0] < n:
        h = np.block([[h, h], [h, -h]]).astype(np.float32)
    return h


def _make_hadamard_kernel(C: int, scale: float):
    """Unrolled fast Walsh-Hadamard transform over the channel (sublane) axis.

    Block layout is (1, C, TS): channels in the sublane dim, the large spatial
    tile in the lane dim.  All work is VPU add/sub — no MXU, no H operand.
    """

    def kernel(x_ref, o_ref):
        v = x_ref[0].astype(jnp.float32)                 # (C, TS)
        rows = [v[c:c + 1, :] for c in range(C)]         # C x (1, TS)

        # Natural-order FWHT == Sylvester H @ x (log2(C) butterfly stages).
        h = 1
        while h < C:
            new_rows = list(rows)
            for start in range(0, C, 2 * h):
                for i in range(start, start + h):
                    a = rows[i]
                    b = rows[i + h]
                    new_rows[i] = a + b
                    new_rows[i + h] = a - b
            rows = new_rows
            h *= 2

        y = jnp.concatenate(rows, axis=0) * jnp.float32(scale)
        o_ref[0] = y.astype(o_ref.dtype)

    return kernel


def hadamard_transform(x: jax.Array) -> jax.Array:
    """x: (N, C, H, W) with C a power of 2. Returns same shape/dtype."""
    N, C, H, W = x.shape
    assert C >= 1 and (C & (C - 1)) == 0, "channel dim must be a power of 2"
    n_log = int(round(np.log2(C))) if C > 1 else 0
    scale = float(2.0 ** (-n_log / 2.0))                 # 1 / 2**(log2(C)/2)

    S = H * W
    x3 = x.reshape(N, C, S)                              # free view, native layout

    # Lane-tile sizing: as large as possible while keeping the pipelined
    # (input + output) double-buffered blocks well inside the scoped VMEM
    # budget on every generation (v7x has only 64 MiB physical / 32 MiB default).
    itemsize = jnp.dtype(x.dtype).itemsize
    vmem_block_budget = 8 * 1024 * 1024                  # bytes for all live blocks
    bytes_per_lane = 2 * 2 * C * itemsize                # 2 bufs * (in + out) * C
    max_ts = max(128, (vmem_block_budget // bytes_per_lane) // 128 * 128)
    ts = S if S <= max_ts else max_ts                    # full dim, or multiple of 128
    grid = (N, pl.cdiv(S, ts))                           # partial last tile is fine

    out3 = pl.pallas_call(
        _make_hadamard_kernel(C, scale),
        out_shape=jax.ShapeDtypeStruct((N, C, S), x.dtype),
        grid_spec=pltpu.PrefetchScalarGridSpec(
            num_scalar_prefetch=0,
            grid=grid,
            in_specs=[pl.BlockSpec((1, C, ts), lambda n, s: (n, 0, s))],
            out_specs=pl.BlockSpec((1, C, ts), lambda n, s: (n, 0, s)),
        ),
        compiler_params=pltpu.CompilerParams(
            dimension_semantics=("parallel", "parallel"),
            vmem_limit_bytes=32 * 1024 * 1024,
        ),
    )(x3)

    return out3.reshape(N, C, H, W)


if __name__ == "__main__":
    # Module config: dim_in == dim_out == C (power of 2).
    N, C, H, W = 2, 4, 16, 16

    # Deterministic parameter init (same as the module's __init__), used only
    # for the pure-JAX reference check — the kernel needs no H operand.
    n_log = int(np.log2(C))
    h_norm = jnp.asarray(_hadamard_matrix(C) / (2.0 ** (n_log / 2.0)), dtype=jnp.float32)

    key = jax.random.PRNGKey(0)
    x = jax.random.normal(key, (N, C, H, W), dtype=jnp.float32)

    y = jax.jit(hadamard_transform)(x)
    y = jax.block_until_ready(y)

    # Reference (mirrors the PyTorch forward exactly).
    y_ref = jnp.transpose(
        jnp.matmul(jnp.transpose(x, (0, 2, 3, 1)), h_norm), (0, 3, 1, 2)
    )
    np.testing.assert_allclose(np.asarray(y), np.asarray(y_ref), rtol=1e-5, atol=1e-5)

    print("KERNEL_OK")
</pallas_src>

<mosaic_0001>
module attributes {stable_mosaic.version = 11 : i64} {
  func.func @kernel(%arg0: i32, %arg1: i32, %arg2: memref<1x4x256xf32, #tpu.memory_space<vmem>>, %arg3: memref<1x4x256xf32, #tpu.memory_space<vmem>>) attributes {dimension_semantics = [#tpu.dimension_semantics<parallel>, #tpu.dimension_semantics<parallel>], iteration_bounds = array<i64: 2, 1>, scalar_prefetch = 0 : i64, scratch_operands = 0 : i64, tpu.core_type = #tpu.core_type<tc>, window_params = [{transform_indices = @transform_0, window_bounds = array<i64: 1, 4, 256>}, {transform_indices = @transform_1, window_bounds = array<i64: 1, 4, 256>}]} {
    %c0 = arith.constant 0 : index
    %c0_0 = arith.constant 0 : index
    %c0_1 = arith.constant 0 : index
    %0 = vector.load %arg2[%c0, %c0_0, %c0_1] : memref<1x4x256xf32, #tpu.memory_space<vmem>>, vector<1x4x256xf32>
    %1 = vector.shape_cast %0 : vector<1x4x256xf32> to vector<4x256xf32>
    %2 = vector.extract_strided_slice %1 {offsets = [0, 0], sizes = [1, 256], strides = [1, 1]} : vector<4x256xf32> to vector<1x256xf32>
    %3 = vector.extract_strided_slice %1 {offsets = [1, 0], sizes = [1, 256], strides = [1, 1]} : vector<4x256xf32> to vector<1x256xf32>
    %4 = vector.extract_strided_slice %1 {offsets = [2, 0], sizes = [1, 256], strides = [1, 1]} : vector<4x256xf32> to vector<1x256xf32>
    %5 = vector.extract_strided_slice %1 {offsets = [3, 0], sizes = [1, 256], strides = [1, 1]} : vector<4x256xf32> to vector<1x256xf32>
    %6 = arith.addf %2, %3 : vector<1x256xf32>
    %7 = arith.subf %2, %3 : vector<1x256xf32>
    %8 = arith.addf %4, %5 : vector<1x256xf32>
    %9 = arith.subf %4, %5 : vector<1x256xf32>
    %10 = arith.addf %6, %8 : vector<1x256xf32>
    %11 = arith.subf %6, %8 : vector<1x256xf32>
    %12 = arith.addf %7, %9 : vector<1x256xf32>
    %13 = arith.subf %7, %9 : vector<1x256xf32>
    %14 = tpu.concatenate %10, %12, %11, %13 in 0 : vector<1x256xf32>, vector<1x256xf32>, vector<1x256xf32>, vector<1x256xf32> -> vector<4x256xf32>
    %cst = arith.constant 5.000000e-01 : f32
    %15 = vector.broadcast %cst : f32 to vector<4x256xf32>
    %16 = arith.mulf %14, %15 : vector<4x256xf32>
    %c0_2 = arith.constant 0 : index
    %c0_3 = arith.constant 0 : index
    %c0_4 = arith.constant 0 : index
    %17 = vector.load %arg3[%c0_2, %c0_3, %c0_4] : memref<1x4x256xf32, #tpu.memory_space<vmem>>, vector<1x4x256xf32>
    %18 = vector.shape_cast %17 : vector<1x4x256xf32> to vector<4x256xf32>
    %19 = vector.shape_cast %16 : vector<4x256xf32> to vector<1x4x256xf32>
    tpu.vector_store %arg3[%c0_2, %c0_3, %c0_4], %19 {strides = array<i32>} : memref<1x4x256xf32, #tpu.memory_space<vmem>>, vector<1x4x256xf32>,
    return
  }
  func.func @transform_0(%arg0: i32, %arg1: i32) -> (i32, i32, i32) {
    %c0_i32 = arith.constant 0 : i32
    %c0_i32_0 = arith.constant 0 : i32
    return %arg0, %c0_i32, %arg1 : i32, i32, i32
  }
  func.func @transform_1(%arg0: i32, %arg1: i32) -> (i32, i32, i32) {
    %c0_i32 = arith.constant 0 : i32
    %c0_i32_0 = arith.constant 0 : i32
    return %arg0, %c0_i32, %arg1 : i32, i32, i32
  }
}

</mosaic_0001>

<bundles_post_ra>
// kernel: hadamard_transform.1
= control target key start
LH: loop header
LB: loop body
LE: loop exit
PB: predicated region body
PF: predicated region fallthrough
CT: control target
= control target key end

     0   :  { %s393_s6 = smov 0   ;;  %s395_s7 = smov 0   ;;  %s433_s0 = inlined_call_operand.vmem [shape: f32[2,4,256], index: 0, kind: input, shape index: {}]   ;;  %s434_s1 = inlined_call_operand.vmem [shape: f32[2,4,256], index: 1, kind: output, shape index: {}]  }
   0x1   :  { %s397_s8 = smov 0  }
   0x2 LB: > { %s23_s9 = sadd.s32 1, %s377_s7  ;;  %p326_p0 = scmp.ge.s32.totalorder %s381_s8, 1  ;;  %s381_s8 = sphi %s397_s8, %s11_s8   ;;  %s377_s7 = sphi %s395_s7, %s436_s7   ;;  %s373_s6 = sphi %s393_s6, %s435_s6  }
   0x3   : > { %p25_p1 = scmp.ge.s32.totalorder %s23_s9, 2  ;;  %p108_p2 = scmp.lt.s32.totalorder %s381_s8, 3 }
   0x5   : > { %s438_s9 = smov (%p25_p1, %s23_s9), 0  ;;  %p109_p3 = pnand %p326_p0, %p108_p2 }
   0x6   : > { %p137_p4 = scmp.lt.s32.totalorder (!%p109_p3), %s373_s6, 1  ;;  %v176_v2 = vlaneseq (!%p109_p3)  ;;  %vm219_vm0 = vcmask (!%p109_p3), 1040384   ;;  %vm222_vm1 = vcmask (!%p109_p3), 1041408   ;;  %vm225_vm2 = vcmask (!%p109_p3), 1042432  }
   0x7   : > { %112 = sbr.rel (%p109_p3) target bundleno = 40 (0x28), region = 24 }
   0x8   : > { %v177_v6 = vshrl.u32 (!%p109_p3), %v176_v2, 7 }
   0xa   : > { %v178_v11 = vsub.s32 (!%p109_p3), 0, %v177_v6  ;;  %v182_v12 = vsub.s32 (!%p109_p3), 4, %v177_v6 }
   0xe   : > { %s440_s6 = smov (!%p137_p4, %s373_s6), 1 }
   0xf   : > { %s333_s10 = sshll.u32 %s440_s6, 3 }
  0x10   : > { %s144_s13 = scalar_lea.vmem %s433_s0, %s333_s10  ;;  %s154_s16 = scalar_lea.vmem %s434_s1, %s333_s10 }
  0x11   : > { %v156_v0 = vld [vmem:[%s144_s13] sm:$0xff] }
  0x12   : > { %v158_v1 = vrot.slane %v156_v0, 5 }
  0x14   : > { %v159_v3 = vrot.slane %v158_v1, 4 }
  0x16   : > { %v161_v4 = vadd.f32 %v159_v3, %v156_v0  ;;  %v162_v5 = vsub.f32 %v156_v0, %v159_v3 }
  0x18   : > { %v164_v7 = vrot.slane %v161_v4, 6  ;;  %v170_v8 = vrot.slane %v162_v5, 6 }
  0x1a   : > { %v165_v9 = vrot.slane %v164_v7, 4  ;;  %v171_v10 = vrot.slane %v170_v8, 4 }
  0x1c   : > { %v167_v13 = vadd.f32 %v165_v9, %v161_v4  ;;  %v168_v14 = vsub.f32 %v161_v4, %v165_v9  ;;  %v173_v15 = vadd.f32 %v171_v10, %v162_v5  ;;  %v174_v16 = vsub.f32 %v162_v5, %v171_v10 }
  0x1e   : > { %v179_v17 = vrot.slane %v167_v13, %v178_v11  ;;  %v183_v18 = vrot.slane %v167_v13, %v182_v12  ;;  %v190_v19 = vrot.slane %v173_v15, %v178_v11  ;;  %v194_v20 = vrot.slane %v173_v15, %v182_v12 }
  0x1f   : > { %v201_v21 = vrot.slane %v168_v14, %v178_v11  ;;  %v205_v22 = vrot.slane %v168_v14, %v182_v12  ;;  %v212_v23 = vrot.slane %v174_v16, %v178_v11  ;;  %v216_v24 = vrot.slane %v174_v16, %v182_v12 }
  0x20   : > { %v220_v25 = vsel %vm219_vm0, %v179_v17, %v190_v19  ;;  %v221_v26 = vsel %vm219_vm0, %v183_v18, %v194_v20 }
  0x21   : > { %v223_v27 = vsel %vm222_vm1, %v220_v25, %v201_v21  ;;  %v224_v28 = vsel %vm222_vm1, %v221_v26, %v205_v22 }
  0x22   : > { %v226_v29 = vsel %vm225_vm2, %v223_v27, %v212_v23  ;;  %v227_v30 = vsel %vm225_vm2, %v224_v28, %v216_v24 }
  0x23   : > { %v228_v31 = vmul.f32 0.5, %v226_v29  ;;  %v229_v32 = vmul.f32 0.5, %v227_v30 }
  0x25   : > { %v232_v33 = vcombine.low %v228_v31, %v229_v32 }
  0x27   : > { %234 = vst [vmem:[%s154_s16] sm:$0xff] %v232_v33 }
  0x28 PF: > { %s11_s8 = sadd.s32 1, %s381_s8   ;;  %s435_s6 = smov %s377_s7 }
  0x29   : > { %p8_p5 = scmp.ge.s32.totalorder %s11_s8, 4   ;;  %s436_s7 = smov %s438_s9 }
  0x2b   :  { %10 = sbr.rel (!%p8_p5) target bundleno = 2 (0x2), region = 54 }

</bundles_post_ra>
